<compile_context>
chip_gen: v6e
topology: v6e:2x2x1
jax: 0.10.0
libtpu: 0.0.40
codegen_flags: <defaults>
</compile_context>

<pallas_src>
import jax
import jax.numpy as jnp
from jax import lax
from jax.experimental import pallas as pl
from jax.experimental.pallas import tpu as pltpu

BN_EPS = 1e-5
CONV_CH = 8                     # channels per conv branch (module spec)
H1 = 2                          # swish_block1 hidden / out width
H2 = 16                         # swish_block2 hidden / out width

# ---- packed-scalar (SMEM) parameter slab layout -----------------------------------
OFF_A1 = 0                      # alpha1 = s1w1[0] - s1w1[1]            -> 2
OFF_S1W2 = OFF_A1 + H1          # s1w2 (2,2) row-major                  -> 4
OFF_S1B2 = OFF_S1W2 + H1 * H1   # s1b2                                  -> 2
OFF_P2B = OFF_S1B2 + H1         # projection2 bias                      -> 1
SCAL_LEN = OFF_P2B + 1


def _silu(x):
    return x * jax.nn.sigmoid(x)


# ----------------------------------------------------------------------------
# Kernel 1: fused Conv1d(k=3, pad=1) for BOTH branches (16 out channels) +
# joint BatchNorm1d (training-mode batch statistics) + SiLU.
# Halo handled in-kernel by shifting the 16-lane conv output through an
# 8-sublane-aligned staging buffer (aligned stores, value-level shifted reads).
# ----------------------------------------------------------------------------
def conv_bn_silu_kernel(x_ref, w_ref, b_ref, g_ref, be_ref, out_ref, zbuf_ref):
    x = x_ref[...]                                 # (N, W, D) unpadded features
    n, w, d = x.shape
    nch = w_ref.shape[-1]                          # 16
    x2 = x.reshape(n * w, d)
    wc = w_ref[...]                                # (3, D, 16)

    z0 = jnp.dot(x2, wc[0], preferred_element_type=jnp.float32).reshape(n, w, nch)
    z1 = jnp.dot(x2, wc[1], preferred_element_type=jnp.float32).reshape(n, w, nch)
    z2 = jnp.dot(x2, wc[2], preferred_element_type=jnp.float32).reshape(n, w, nch)

    # out[:, p] = z0[:, p-1] + z1[:, p] + z2[:, p+1]   (zero outside [0, W))
    zbuf_ref[...] = jnp.zeros_like(zbuf_ref)       # (N, W+16, 16); rows [8, 8+W) used
    zbuf_ref[:, 8:8 + w, :] = z0                   # sublane-aligned store
    zb0 = zbuf_ref[...]
    y = z1 + zb0[:, 7:7 + w, :] + b_ref[...]       # z0 shifted by +1 token
    zbuf_ref[:, 8:8 + w, :] = z2
    zb2 = zbuf_ref[...]
    y = y + zb2[:, 9:9 + w, :]                     # z2 shifted by -1 token

    # BatchNorm1d, training mode: biased per-channel statistics over (N, W)
    mean = jnp.mean(y, axis=(0, 1), keepdims=True)
    var = jnp.mean(jnp.square(y - mean), axis=(0, 1), keepdims=True)
    yn = (y - mean) * lax.rsqrt(var + BN_EPS) * g_ref[...] + be_ref[...]
    out_ref[...] = _silu(yn)


# ----------------------------------------------------------------------------
# Kernel 2: per-(batch, T-tile) fused hot path.
#   SwishBlock2 first layer : one lane-dense (W*16, Tt) plane (rank-1 structure)
#   SwishBlock2 second layer: block-diagonal MXU matmul (W*16, W*16)@(W*16, Tt)
#   projection2             : block-diagonal MXU matmul (W, W*16)@(W*16, Tt)
#   SwishBlock1 (2 channels): tiny, stays on the VPU as (W, Tt) planes
#   softmax -> attn contractions -> projection1 -> (D, Tt) lane-dense output
# ----------------------------------------------------------------------------
def upsample_kernel(scal_ref, t_ref, beta1_ref, beta2_ref, ab2_ref, wbd_ref,
                    p2bd_ref, featT_ref, p1wT_ref, p1b_ref, o_ref):
    tv = t_ref[...]                               # (1, Tt)  frame times (lanes = T)
    beta1 = beta1_ref[0]                          # (W, 2)   token-only block1 term
    beta2 = beta2_ref[0]                          # (W*16, 1) token-only block2 term
    alpha2 = ab2_ref[:, 0:1]                      # (W*16, 1) per-channel T coefficient
    b2rep = ab2_ref[:, 1:2]                       # (W*16, 1) second-layer bias (tiled)

    # SwishBlock2 -------------------------------------------------------------
    h2 = _silu(alpha2 * tv + beta2)                                        # (W*16, Tt)
    z2 = jnp.dot(wbd_ref[...], h2, preferred_element_type=jnp.float32) + b2rep
    a2 = _silu(z2)                                                         # (W*16, Tt)
    logits = (jnp.dot(p2bd_ref[...], a2, preferred_element_type=jnp.float32)
              + scal_ref[OFF_P2B])                                         # (W, Tt)

    # SwishBlock1 (H1 = 2) ----------------------------------------------------
    h1a = _silu(scal_ref[OFF_A1 + 0] * tv + beta1[:, 0:1])                 # (W, Tt)
    h1b = _silu(scal_ref[OFF_A1 + 1] * tv + beta1[:, 1:2])
    C0 = _silu(h1a * scal_ref[OFF_S1W2 + 0] + h1b * scal_ref[OFF_S1W2 + 2]
               + scal_ref[OFF_S1B2 + 0])
    C1 = _silu(h1a * scal_ref[OFF_S1W2 + 1] + h1b * scal_ref[OFF_S1W2 + 3]
               + scal_ref[OFF_S1B2 + 1])

    # softmax over the token axis (dim=1 of (N, W, T)) == axis 0 here
    m = jnp.max(logits, axis=0, keepdims=True)
    ex = jnp.exp(logits - m)
    attn = ex * pl.reciprocal(jnp.sum(ex, axis=0, keepdims=True), approx=False)

    # xl[p, t] = sum_k attn[k, t] * C_p[k, t]
    xl0 = jnp.sum(attn * C0, axis=0, keepdims=True)                        # (1, Tt)
    xl1 = jnp.sum(attn * C1, axis=0, keepdims=True)

    # Lane-dense (D, Tt) epilogue: MXU for attn^T-free contraction, VPU broadcasts
    # for projection1, unmasked stores along the frame axis.
    out = jnp.dot(featT_ref[0], attn, preferred_element_type=jnp.float32)  # (D, Tt)
    out = out + p1wT_ref[:, 0:1] * xl0 + p1wT_ref[:, 1:2] * xl1 + p1b_ref[...]
    o_ref[0] = out.astype(o_ref.dtype)


# ----------------------------------------------------------------------------
# Tiling / VMEM policy (generation aware)
# ----------------------------------------------------------------------------
def _vmem_capacity_bytes():
    try:
        info = pltpu.get_tpu_info()
        return int(getattr(info, "vmem_capacity_bytes", 64 * 1024 * 1024))
    except Exception:
        return 64 * 1024 * 1024          # conservative (v7x per-TensorCore VMEM)


def _choose_tile_t(tl, wl, d, vmem_cap):
    """Frame-axis tile: lane dense (multiple of 128) unless the whole axis fits."""
    if tl <= 512:
        return tl                         # single block == full dim (allowed)
    # rough per-column live set (f32): ~3 (W*16,Tt) planes + ~10 (W,Tt) planes
    # + (D,Tt) output (double buffered), with a 2x safety margin.
    per_col = 8 * (3 * wl * H2 + 10 * wl + 2 * d + 8)
    fit = max(128, (vmem_cap // 2) // max(per_col, 1))
    cap = 1024 if vmem_cap >= (96 << 20) else 512     # v5e/v6e: bigger tiles; v7x: <=512
    tile = int(min(fit, cap))
    return max(128, (tile // 128) * 128)


# ----------------------------------------------------------------------------
# Wrapper
# ----------------------------------------------------------------------------
def upsampling_forward(T, durations, features, params):
    n, wl, d = features.shape
    tl = T.shape[0]
    f32 = jnp.float32
    feat = features.astype(f32)
    nch = 2 * CONV_CH

    # ---- kernel 1: fused conv (both branches) + joint BN + SiLU ------------------
    wcat = jnp.concatenate([params["c1w"], params["c2w"]], axis=-1).astype(f32)   # (3,D,16)
    bcat = jnp.concatenate([params["c1b"], params["c2b"]], axis=-1).astype(f32)   # (1,16)
    gcat = jnp.concatenate([params["bn1_g"], params["bn2_g"]], axis=-1).astype(f32)
    becat = jnp.concatenate([params["bn1_b"], params["bn2_b"]], axis=-1).astype(f32)

    ce1 = pl.CostEstimate(
        flops=int(2 * 3 * n * wl * d * nch + 16 * n * wl * nch),
        transcendentals=int(n * wl * nch),
        bytes_accessed=int(4 * (n * wl * d + n * wl * nch + 3 * d * nch + 4 * nch)))

    lr = pl.pallas_call(
        conv_bn_silu_kernel,
        out_shape=jax.ShapeDtypeStruct((n, wl, nch), f32),
        scratch_shapes=[pltpu.VMEM((n, wl + 16, nch), f32)],
        cost_estimate=ce1,
    )(feat, wcat, bcat, gcat, becat)
    # TODO(synk): tile over N*W with a two-pass BN (sum/sumsq accumulation) before
    # production batch sizes; currently the whole batch is one invocation.

    left = lr[..., :CONV_CH]           # (N, W, 8)
    right = lr[..., CONV_CH:]          # (N, W, 8)

    # ---- token-only precompute (hoisted out of the per-(b, T-tile) kernel) -------
    dur = durations.astype(f32)
    te = jnp.cumsum(dur, axis=1)
    ts = te - dur

    s1w1 = params["s1w1"].astype(f32); s1b1 = params["s1b1"].astype(f32)
    s1w2 = params["s1w2"].astype(f32); s1b2 = params["s1b2"].astype(f32)
    s2w1 = params["s2w1"].astype(f32); s2b1 = params["s2b1"].astype(f32)
    s2w2 = params["s2w2"].astype(f32); s2b2 = params["s2b2"].astype(f32)
    p1w = params["p1w"].astype(f32);  p1b = params["p1b"].astype(f32)
    p2w = params["p2w"].astype(f32);  p2b = params["p2b"].astype(f32)

    # First SwishBlock layers are affine rank-1 in (token, frame):
    #   pre[k, h, t] = alpha[h] * T[t] + beta[k, h]
    alpha1 = s1w1[0] - s1w1[1]                                                   # (2,)
    beta1 = (-ts[..., None] * s1w1[0] + te[..., None] * s1w1[1]
             + jnp.einsum('nwc,ch->nwh', left, s1w1[2:]) + s1b1[0])              # (N, W, 2)
    alpha2 = s2w1[0] - s2w1[1]                                                   # (16,)
    beta2 = (-ts[..., None] * s2w1[0] + te[..., None] * s2w1[1]
             + jnp.einsum('nwc,ch->nwh', right, s2w1[2:]) + s2b1[0])             # (N, W, 16)
    beta2f = beta2.reshape(n, wl * H2, 1)

    alpha2_rep = jnp.tile(alpha2, wl).reshape(wl * H2, 1)
    b2_rep = jnp.tile(s2b2[0], wl).reshape(wl * H2, 1)
    ab2 = jnp.concatenate([alpha2_rep, b2_rep], axis=1)                          # (W*16, 2)

    # Block-diagonal second-layer / projection2 weights -> MXU matmuls in-kernel.
    eye_w = jnp.eye(wl, dtype=f32)
    wbd = jnp.kron(eye_w, s2w2.T)                                                # (W*16, W*16)
    p2bd = jnp.kron(eye_w, p2w[:, 0][None, :])                                   # (W, W*16)

    featT = jnp.transpose(feat, (0, 2, 1))                                       # (N, D, W)
    p1wT = jnp.transpose(p1w, (1, 0))                                            # (D, 2)
    p1b_col = p1b.reshape(d, 1)                                                  # (D, 1)

    scal = jnp.concatenate([alpha1, s1w2.reshape(-1), s1b2.reshape(-1),
                            p2b.reshape(-1)]).astype(f32)
    assert scal.shape[0] == SCAL_LEN

    # ---- frame-axis tiling (lane dense, generation aware) ------------------------
    vmem_cap = _vmem_capacity_bytes()
    tile_t = _choose_tile_t(tl, wl, d, vmem_cap)
    tl_pad = ((tl + tile_t - 1) // tile_t) * tile_t
    nt = tl_pad // tile_t
    t_in = T.astype(f32).reshape(1, tl)
    if tl_pad != tl:
        t_in = jnp.pad(t_in, ((0, 0), (0, tl_pad - tl)), mode="edge")

    kw = wl * H2
    ce2 = pl.CostEstimate(
        flops=int(n * tl_pad * (2 * kw * kw + 2 * wl * kw + 2 * d * wl
                                + 16 * kw + 40 * wl + 8 * d)),
        transcendentals=int(n * tl_pad * (2 * kw + 5 * wl + 2)),
        bytes_accessed=int(4 * (n * nt * (kw * kw + wl * kw + wl * (H1 + H2 + d) + 3 * d)
                                + n * tl_pad * (d + 1))))

    grid_spec = pltpu.PrefetchScalarGridSpec(
        num_scalar_prefetch=0,
        grid=(n, nt),                       # both parallel (megacore-shardable)
        in_specs=[
            pl.BlockSpec(memory_space=pltpu.MemorySpace.SMEM),           # packed scalars
            pl.BlockSpec((1, tile_t), lambda b, j: (0, j)),              # frame times
            pl.BlockSpec((1, wl, H1), lambda b, j: (b, 0, 0)),           # beta1
            pl.BlockSpec((1, kw, 1), lambda b, j: (b, 0, 0)),            # beta2 (flat)
            pl.BlockSpec((kw, 2), lambda b, j: (0, 0)),                  # [alpha2 | b2]
            pl.BlockSpec((kw, kw), lambda b, j: (0, 0)),                 # block-diag w2
            pl.BlockSpec((wl, kw), lambda b, j: (0, 0)),                 # block-diag p2w
            pl.BlockSpec((1, d, wl), lambda b, j: (b, 0, 0)),            # features (D, W)
            pl.BlockSpec((d, H1), lambda b, j: (0, 0)),                  # projection1 w^T
            pl.BlockSpec((d, 1), lambda b, j: (0, 0)),                   # projection1 b
        ],
        out_specs=pl.BlockSpec((1, d, tile_t), lambda b, j: (b, 0, j)),
    )

    out_dt = pl.pallas_call(
        upsample_kernel,
        out_shape=jax.ShapeDtypeStruct((n, d, tl_pad), f32),
        grid_spec=grid_spec,
        compiler_params=pltpu.CompilerParams(
            dimension_semantics=("parallel", "parallel"),
            vmem_limit_bytes=int(max(16 << 20, vmem_cap * 0.55))),
        cost_estimate=ce2,
    )(scal, t_in, beta1, beta2f, ab2, wbd, p2bd, featT, p1wT, p1b_col)

    # (N, D, T_pad) -> (N, T, D): the (n, d, tl) store keeps the kernel's store lane
    # dimension a multiple of 128 (unmasked vst) even when d < 128.
    return jnp.transpose(out_dt[:, :, :tl], (0, 2, 1))


# ----------------------------------------------------------------------------
# Pure-JAX reference (mirrors the PyTorch forward) for validation.
# ----------------------------------------------------------------------------
def reference_forward(T, durations, features, params):
    n, wl, d = features.shape
    tl = T.shape[0]
    xpad = jnp.pad(features, ((0, 0), (1, 1), (0, 0)))

    def conv(cw, cb):
        y = cb
        for k in range(3):
            y = y + jnp.einsum('nwd,do->nwo', xpad[:, k:k + wl, :], cw[k])
        return y

    def bn_silu(y, g, b):
        mean = jnp.mean(y, axis=(0, 1), keepdims=True)
        var = jnp.mean((y - mean) ** 2, axis=(0, 1), keepdims=True)
        yn = (y - mean) / jnp.sqrt(var + BN_EPS) * g + b
        return yn * jax.nn.sigmoid(yn)

    left = bn_silu(conv(params["c1w"], params["c1b"]), params["bn1_g"], params["bn1_b"])
    right = bn_silu(conv(params["c2w"], params["c2b"]), params["bn2_g"], params["bn2_b"])

    te = jnp.cumsum(durations, axis=1)
    ts = te - durations
    S = T[None, None, :] - ts[..., None]           # (N, W, T)
    E = te[..., None] - T[None, None, :]           # (N, W, T)

    xl_in = jnp.concatenate(
        [S[..., None], E[..., None],
         jnp.broadcast_to(left[:, :, None, :], (n, wl, tl, 8))], axis=-1)
    xr_in = jnp.concatenate(
        [S[..., None], E[..., None],
         jnp.broadcast_to(right[:, :, None, :], (n, wl, tl, 8))], axis=-1)

    def swish(x, w1, b1, w2, b2):
        h = x @ w1 + b1
        h = h * jax.nn.sigmoid(h)
        h = h @ w2 + b2
        return h * jax.nn.sigmoid(h)

    C = swish(xl_in, params["s1w1"], params["s1b1"][0], params["s1w2"], params["s1b2"][0])
    hr = swish(xr_in, params["s2w1"], params["s2b1"][0], params["s2w2"], params["s2b2"][0])
    logits = (hr @ params["p2w"] + params["p2b"][0])[..., 0]
    Wsm = jax.nn.softmax(logits, axis=1)
    feat_ncw = jnp.transpose(features, (0, 2, 1))
    xr_out = jnp.einsum('nkt,ndk->ntd', Wsm, feat_ncw)
    xl_out = jnp.einsum('nkt,nktp->ntp', Wsm, C) @ params["p1w"] + params["p1b"][0]
    return xl_out + xr_out


def init_params(key, dim):
    ks = jax.random.split(key, 16)
    f32 = jnp.float32

    def w(k, shape, scale=0.2):
        return (scale * jax.random.normal(k, shape)).astype(f32)

    return {
        "c1w": w(ks[0], (3, dim, 8)), "c1b": w(ks[1], (1, 8)),
        "c2w": w(ks[2], (3, dim, 8)), "c2b": w(ks[3], (1, 8)),
        "bn1_g": jnp.ones((1, 8), f32), "bn1_b": jnp.zeros((1, 8), f32),
        "bn2_g": jnp.ones((1, 8), f32), "bn2_b": jnp.zeros((1, 8), f32),
        "s1w1": w(ks[4], (10, 2)), "s1b1": w(ks[5], (1, 2)),
        "s1w2": w(ks[6], (2, 2)), "s1b2": w(ks[7], (1, 2)),
        "s2w1": w(ks[8], (10, 16)), "s2b1": w(ks[9], (1, 16)),
        "s2w2": w(ks[10], (16, 16)), "s2b2": w(ks[11], (1, 16)),
        "p1w": w(ks[12], (2, dim)), "p1b": w(ks[13], (1, dim)),
        "p2w": w(ks[14], (16, 1)), "p2b": w(ks[15], (1, 1)),
    }


if __name__ == "__main__":
    dim, N, W_LEN, T_LEN = 4, 2, 8, 16

    key = jax.random.PRNGKey(0)
    kp, kd, kf = jax.random.split(key, 3)
    params = init_params(kp, dim)

    T = jnp.arange(T_LEN, dtype=jnp.float32) + 0.5                      # frame centers
    durations = jax.random.uniform(kd, (N, W_LEN), jnp.float32, 1.0, 3.0)
    features = jax.random.normal(kf, (N, W_LEN, dim), jnp.float32)      # N W C

    out = jax.block_until_ready(upsampling_forward(T, durations, features, params))
    ref = reference_forward(T, durations, features, params)

    assert out.shape == (N, T_LEN, dim), out.shape
    max_err = float(jnp.max(jnp.abs(out - ref)))
    assert max_err < 1e-3, f"max abs err {max_err}"
    print("KERNEL_OK")
</pallas_src>

<mosaic_0001>
module attributes {stable_mosaic.version = 11 : i64} {
  func.func @conv_bn_silu_kernel(%arg0: memref<2x8x4xf32, #tpu.memory_space<vmem>>, %arg1: memref<3x4x16xf32, #tpu.memory_space<vmem>>, %arg2: memref<1x16xf32, #tpu.memory_space<vmem>>, %arg3: memref<1x16xf32, #tpu.memory_space<vmem>>, %arg4: memref<1x16xf32, #tpu.memory_space<vmem>>, %arg5: memref<2x8x16xf32, #tpu.memory_space<vmem>>, %arg6: memref<2x24x16xf32, #tpu.memory_space<vmem>>) attributes {dimension_semantics = [], scalar_prefetch = 0 : i64, scratch_operands = 1 : i64, tpu.core_type = #tpu.core_type<tc>} {
    %c0 = arith.constant 0 : index
    %c0_0 = arith.constant 0 : index
    %c0_1 = arith.constant 0 : index
    %0 = vector.load %arg0[%c0, %c0_0, %c0_1] : memref<2x8x4xf32, #tpu.memory_space<vmem>>, vector<2x8x4xf32>
    %1 = vector.shape_cast %0 : vector<2x8x4xf32> to vector<16x4xf32>
    %c0_2 = arith.constant 0 : index
    %c0_3 = arith.constant 0 : index
    %c0_4 = arith.constant 0 : index
    %2 = vector.load %arg1[%c0_2, %c0_3, %c0_4] : memref<3x4x16xf32, #tpu.memory_space<vmem>>, vector<3x4x16xf32>
    %3 = vector.extract_strided_slice %2 {offsets = [0, 0, 0], sizes = [1, 4, 16], strides = [1, 1, 1]} : vector<3x4x16xf32> to vector<1x4x16xf32>
    %4 = vector.shape_cast %3 : vector<1x4x16xf32> to vector<4x16xf32>
    %cst = arith.constant dense<0.000000e+00> : vector<16x16xf32>
    %5 = tpu.matmul %1, %4, %cst {dimension_numbers = #tpu.dot_dimension_numbers<[1], [0], [0], [1], [0, 0, 1, 1], [], []>} : vector<16x4xf32>, vector<4x16xf32>, vector<16x16xf32> -> vector<16x16xf32>
    %6 = vector.shape_cast %5 : vector<16x16xf32> to vector<2x8x16xf32>
    %7 = vector.extract_strided_slice %2 {offsets = [1, 0, 0], sizes = [1, 4, 16], strides = [1, 1, 1]} : vector<3x4x16xf32> to vector<1x4x16xf32>
    %8 = vector.shape_cast %7 : vector<1x4x16xf32> to vector<4x16xf32>
    %cst_5 = arith.constant dense<0.000000e+00> : vector<16x16xf32>
    %9 = tpu.matmul %1, %8, %cst_5 {dimension_numbers = #tpu.dot_dimension_numbers<[1], [0], [0], [1], [0, 0, 1, 1], [], []>} : vector<16x4xf32>, vector<4x16xf32>, vector<16x16xf32> -> vector<16x16xf32>
    %10 = vector.shape_cast %9 : vector<16x16xf32> to vector<2x8x16xf32>
    %11 = vector.extract_strided_slice %2 {offsets = [2, 0, 0], sizes = [1, 4, 16], strides = [1, 1, 1]} : vector<3x4x16xf32> to vector<1x4x16xf32>
    %12 = vector.shape_cast %11 : vector<1x4x16xf32> to vector<4x16xf32>
    %cst_6 = arith.constant dense<0.000000e+00> : vector<16x16xf32>
    %13 = tpu.matmul %1, %12, %cst_6 {dimension_numbers = #tpu.dot_dimension_numbers<[1], [0], [0], [1], [0, 0, 1, 1], [], []>} : vector<16x4xf32>, vector<4x16xf32>, vector<16x16xf32> -> vector<16x16xf32>
    %14 = vector.shape_cast %13 : vector<16x16xf32> to vector<2x8x16xf32>
    %cst_7 = arith.constant 0.000000e+00 : f32
    %15 = vector.broadcast %cst_7 : f32 to vector<2x24x16xf32>
    %c0_8 = arith.constant 0 : index
    %c0_9 = arith.constant 0 : index
    %c0_10 = arith.constant 0 : index
    %16 = vector.load %arg6[%c0_8, %c0_9, %c0_10] : memref<2x24x16xf32, #tpu.memory_space<vmem>>, vector<2x24x16xf32>
    tpu.vector_store %arg6[%c0_8, %c0_9, %c0_10], %15 {strides = array<i32>} : memref<2x24x16xf32, #tpu.memory_space<vmem>>, vector<2x24x16xf32>,
    %c0_11 = arith.constant 0 : index
    %c8 = arith.constant 8 : index
    %c0_12 = arith.constant 0 : index
    %17 = vector.load %arg6[%c0_11, %c8, %c0_12] : memref<2x24x16xf32, #tpu.memory_space<vmem>>, vector<2x8x16xf32>
    tpu.vector_store %arg6[%c0_11, %c8, %c0_12], %6 {strides = array<i32>} : memref<2x24x16xf32, #tpu.memory_space<vmem>>, vector<2x8x16xf32>,
    %c0_13 = arith.constant 0 : index
    %c0_14 = arith.constant 0 : index
    %c0_15 = arith.constant 0 : index
    %18 = vector.load %arg6[%c0_13, %c0_14, %c0_15] : memref<2x24x16xf32, #tpu.memory_space<vmem>>, vector<2x24x16xf32>
    %19 = vector.extract_strided_slice %18 {offsets = [0, 7, 0], sizes = [2, 8, 16], strides = [1, 1, 1]} : vector<2x24x16xf32> to vector<2x8x16xf32>
    %20 = arith.addf %10, %19 : vector<2x8x16xf32>
    %c0_16 = arith.constant 0 : index
    %c0_17 = arith.constant 0 : index
    %21 = vector.load %arg2[%c0_16, %c0_17] : memref<1x16xf32, #tpu.memory_space<vmem>>, vector<1x16xf32>
    %22 = vector.shape_cast %21 : vector<1x16xf32> to vector<1x1x16xf32>
    %23 = vector.broadcast %22 : vector<1x1x16xf32> to vector<2x8x16xf32>
    %24 = arith.addf %20, %23 : vector<2x8x16xf32>
    %c0_18 = arith.constant 0 : index
    %c8_19 = arith.constant 8 : index
    %c0_20 = arith.constant 0 : index
    %25 = vector.load %arg6[%c0_18, %c8_19, %c0_20] : memref<2x24x16xf32, #tpu.memory_space<vmem>>, vector<2x8x16xf32>
    tpu.vector_store %arg6[%c0_18, %c8_19, %c0_20], %14 {strides = array<i32>} : memref<2x24x16xf32, #tpu.memory_space<vmem>>, vector<2x8x16xf32>,
    %c0_21 = arith.constant 0 : index
    %c0_22 = arith.constant 0 : index
    %c0_23 = arith.constant 0 : index
    %26 = vector.load %arg6[%c0_21, %c0_22, %c0_23] : memref<2x24x16xf32, #tpu.memory_space<vmem>>, vector<2x24x16xf32>
    %27 = vector.extract_strided_slice %26 {offsets = [0, 9, 0], sizes = [2, 8, 16], strides = [1, 1, 1]} : vector<2x24x16xf32> to vector<2x8x16xf32>
    %28 = arith.addf %24, %27 : vector<2x8x16xf32>
    %cst_24 = arith.constant dense<0.000000e+00> : vector<16xf32>
    %29 = vector.multi_reduction <add>, %28, %cst_24 [0, 1] : vector<2x8x16xf32> to vector<16xf32>
    %30 = vector.shape_cast %29 : vector<16xf32> to vector<1x1x16xf32>
    %cst_25 = arith.constant 1.600000e+01 : f32
    %31 = vector.broadcast %cst_25 : f32 to vector<1x1x16xf32>
    %32 = arith.divf %30, %31 : vector<1x1x16xf32>
    %33 = vector.broadcast %32 : vector<1x1x16xf32> to vector<2x8x16xf32>
    %34 = arith.subf %28, %33 : vector<2x8x16xf32>
    %35 = arith.mulf %34, %34 : vector<2x8x16xf32>
    %cst_26 = arith.constant dense<0.000000e+00> : vector<16xf32>
    %36 = vector.multi_reduction <add>, %35, %cst_26 [0, 1] : vector<2x8x16xf32> to vector<16xf32>
    %37 = vector.shape_cast %36 : vector<16xf32> to vector<1x1x16xf32>
    %cst_27 = arith.constant 1.600000e+01 : f32
    %38 = vector.broadcast %cst_27 : f32 to vector<1x1x16xf32>
    %39 = arith.divf %37, %38 : vector<1x1x16xf32>
    %40 = vector.broadcast %32 : vector<1x1x16xf32> to vector<2x8x16xf32>
    %41 = arith.subf %28, %40 : vector<2x8x16xf32>
    %cst_28 = arith.constant 9.99999974E-6 : f32
    %42 = vector.broadcast %cst_28 : f32 to vector<1x1x16xf32>
    %43 = arith.addf %39, %42 : vector<1x1x16xf32>
    %44 = math.rsqrt %43 : vector<1x1x16xf32>
    %45 = vector.broadcast %44 : vector<1x1x16xf32> to vector<2x8x16xf32>
    %46 = arith.mulf %41, %45 : vector<2x8x16xf32>
    %c0_29 = arith.constant 0 : index
    %c0_30 = arith.constant 0 : index
    %47 = vector.load %arg3[%c0_29, %c0_30] : memref<1x16xf32, #tpu.memory_space<vmem>>, vector<1x16xf32>
    %48 = vector.shape_cast %47 : vector<1x16xf32> to vector<1x1x16xf32>
    %49 = vector.broadcast %48 : vector<1x1x16xf32> to vector<2x8x16xf32>
    %50 = arith.mulf %46, %49 : vector<2x8x16xf32>
    %c0_31 = arith.constant 0 : index
    %c0_32 = arith.constant 0 : index
    %51 = vector.load %arg4[%c0_31, %c0_32] : memref<1x16xf32, #tpu.memory_space<vmem>>, vector<1x16xf32>
    %52 = vector.shape_cast %51 : vector<1x16xf32> to vector<1x1x16xf32>
    %53 = vector.broadcast %52 : vector<1x1x16xf32> to vector<2x8x16xf32>
    %54 = arith.addf %50, %53 : vector<2x8x16xf32>
    %55 = arith.negf %54 : vector<2x8x16xf32>
    %56 = math.exp %55 : vector<2x8x16xf32>
    %cst_33 = arith.constant 1.000000e+00 : f32
    %57 = vector.broadcast %cst_33 : f32 to vector<2x8x16xf32>
    %58 = arith.addf %57, %56 : vector<2x8x16xf32>
    %59 = arith.divf %57, %58 : vector<2x8x16xf32>
    %60 = arith.mulf %54, %59 : vector<2x8x16xf32>
    %c0_34 = arith.constant 0 : index
    %c0_35 = arith.constant 0 : index
    %c0_36 = arith.constant 0 : index
    %61 = vector.load %arg5[%c0_34, %c0_35, %c0_36] : memref<2x8x16xf32, #tpu.memory_space<vmem>>, vector<2x8x16xf32>
    tpu.vector_store %arg5[%c0_34, %c0_35, %c0_36], %60 {strides = array<i32>} : memref<2x8x16xf32, #tpu.memory_space<vmem>>, vector<2x8x16xf32>,
    return
  }
}

</mosaic_0001>

<bundles_post_ra>
// kernel: tpu_custom_call.1
= control target key start
LH: loop header
LB: loop body
LE: loop exit
PB: predicated region body
PF: predicated region fallthrough
CT: control target
= control target key end

     0   :  { %vm33_vm0 = vcmask 1043456   ;;  %vm26_vm1 = vcmask 31744   ;;  %s562_s0 = inlined_call_operand.vmem [shape: f32[2,8,4], index: 0, kind: input, shape index: {}]   ;;  %s563_s1 = inlined_call_operand.vmem [shape: f32[3,4,16], index: 1, kind: input, shape index: {}]   ;;  %s564_s2 = inlined_call_operand.vmem [shape: f32[1,16], index: 2, kind: input, shape index: {}]   ;;  %s565_s3 = inlined_call_operand.vmem [shape: f32[1,16], index: 3, kind: input, shape index: {}]   ;;  %s566_s4 = inlined_call_operand.vmem [shape: f32[1,16], index: 4, kind: input, shape index: {}]   ;;  %s567_s5 = inlined_call_operand.hbm [shape: f32[2,8,16], index: 5, kind: output, shape index: {}]  }
   0x1   :  { %v23_v0 = vld [vmem:[%s563_s1] sm:$0xf]  ;;  %v22_v2 = vld [vmem:[%s562_s0 + $0x8] sm:$0xff]  ;;  %v24_v4 = vld [vmem:[%s563_s1 + $0x4] sm:$0xf] }
   0x2   :  { %v21_v1 = vld [vmem:[%s562_s0] sm:$0xff]  ;;  %428 = vmatprep.subr.msk.mxu0 %vm33_vm0, %v23_v0  ;;  %v25_v3 = vld [vmem:[%s563_s1 + $0x8] sm:$0xf] }
   0x3   :  { %430 = vmatprep.mubr.msk.f32.mxu0 %vm26_vm1, %v21_v1 }
   0x4   :  { %10 = vsyncpa [#allocation4], 0  ;;  %429 = vmatpush3.msk.msra.mxu0 %vm33_vm0, %v23_v0  ;;  %433 = vmatprep.subr.msk.mxu1 %vm33_vm0, %v24_v4  ;;  %vm268_vm2 = vcmask 130048   ;;  %v479_v5 = vmov 0.0   ;;  %vm285_vm3 = vcmask 1040384   ;;  %vm315_vm4 = vcmask 1046528  }
   0x5   :  { %431 = vmatmul.mubr.msk.f32.vlgmr.msra.gmra.mxu0 %vm26_vm1, %v22_v2  ;;  %438 = vmatprep.subr.msk.mxu0 %vm33_vm0, %v25_v3  ;;  %269 = vst.msk [vmem:[#allocation2] sm:$0xff] %vm268_vm2, %v479_v5  ;;  %271 = vst.msk [vmem:[#allocation2 + $0x10] sm:$0xff] %vm268_vm2, %v479_v5  ;;  %v414_v25 = vld [vmem:[%s564_s2] ss:$0 sm:$0xff] }
   0x6   :  { %439 = vmatpush3.msk.msra.mxu0 %vm33_vm0, %v25_v3  ;;  %440 = vmatprep.mubr.msk.f32.mxu0 %vm26_vm1, %v21_v1  ;;  %272 = vst.msk [vmem:[#allocation2 + $0x18] sm:$0xff] %vm268_vm2, %v479_v5  ;;  %273 = vst.msk [vmem:[#allocation2 + $0x20] sm:$0xff] %vm268_vm2, %v479_v5 }
   0x7   :  { %434 = vmatpush3.msk.msra.mxu1 %vm33_vm0, %v24_v4  ;;  %435 = vmatprep.mubr.msk.f32.mxu1 %vm26_vm1, %v21_v1  ;;  %274 = vst.msk [vmem:[#allocation2 + $0x28] sm:$0xff] %vm268_vm2, %v479_v5  ;;  %270 = vst.msk [vmem:[#allocation2 + $0x8] sm:$0xff] %vm268_vm2, %v479_v5  ;;  %v415_v1 = vld [vmem:[%s565_s3] ss:$0 sm:$0xff]  ;;  %s480_s3 = smov [#allocation3]  }
   0x8   :  { %436 = vmatmul.mubr.msk.f32.vlgmr.msra.gmra.mxu1 %vm26_vm1, %v22_v2  ;;  %v416_v4 = vld [vmem:[%s566_s4] ss:$0 sm:$0xff]  ;;  %s394_s6 = sshll.u32 %s480_s3, 4  ;;  %s395_s6 = int_to_ptr.vmem [resolvable:$true] %s394_s6 }
   0x9   :  { %441 = vmatmul.mubr.msk.f32.vlgmr.msra.gmra.mxu0 %vm26_vm1, %v22_v2  ;;  %s457_s4 = scalar_lea.vmem %s395_s6, 256  ;;  %p462_p1 = scmp.lt.s32.totalorder %s395_s6, %s395_s6 }
   0xa   :  { %p458_p0 = scmp.ne.s32.totalorder %s395_s6, %s457_s4  ;;  %p463_p2 = scmp.lt.s32.totalorder %s457_s4, %s457_s4 }
   0xc   :  { %v277_v10 = vld [vmem:[#allocation2] sm:$0xff]  ;;  %v308_v24 = vld [vmem:[#allocation2 + $0x10] sm:$0xff]  ;;  %p464_p3 = por %p463_p2, %p462_p1 }
   0xd   :  { %v279_v8 = vld [vmem:[#allocation2 + $0x18] sm:$0xff]  ;;  %v286_v15 = vrot.slane %v277_v10, 7  ;;  %v317_v30 = vrot.slane %v308_v24, 1 }
   0xe   :  { %v289_v11 = vrot.slane %v279_v8, 7  ;;  %v310_v20 = vld [vmem:[#allocation2 + $0x28] sm:$0xff]  ;;  %p465_p4 = pnand %p464_p3, %p458_p0 }
   0xf   :  { %v320_v26 = vrot.slane %v310_v20, 1 }
  0xc5   :  { %v432_v6 = vpop.f32.mrf.mxu0 }
  0xc6   :  { %276 = vst.msk [vmem:[#allocation2 + $0x20] sm:$0xff] %vm268_vm2, %v432_v6 }
  0xc7   :  { %v103_v7 = vpop.f32.mrf.mxu0 }
  0xc8   :  { %275 = vst.msk [vmem:[#allocation2 + $0x8] sm:$0xff] %vm268_vm2, %v103_v7  ;;  %v437_v13 = vpop.f32.mrf.mxu1 }
  0xc9   :  { %v442_v9 = vpop.f32.mrf.mxu0 }
  0xca   :  { %v181_v21 = vpop.f32.mrf.mxu1 }
  0xcb   :  { %v259_v16 = vpop.f32.mrf.mxu0 }
  0xcd   :  { %v280_v12 = vld [vmem:[#allocation2 + $0x20] sm:$0xff] }
  0xce   :  { %306 = vst.msk [vmem:[#allocation2 + $0x20] sm:$0xff] %vm268_vm2, %v442_v9  ;;  %v290_v14 = vrot.slane %v280_v12, 7 }
  0xcf   :  { %v278_v17 = vld [vmem:[#allocation2 + $0x8] sm:$0xff] }
  0xd0   :  { %305 = vst.msk [vmem:[#allocation2 + $0x8] sm:$0xff] %vm268_vm2, %v259_v16  ;;  %v291_v18 = vsel %vm285_vm3, %v289_v11, %v290_v14  ;;  %v287_v19 = vrot.slane %v278_v17, 7 }
  0xd1   :  { %v295_v23 = vadd.f32 %v437_v13, %v291_v18 }
  0xd2   :  { %v288_v22 = vsel %vm285_vm3, %v286_v15, %v287_v19 }
  0xd3   :  { %v294_v28 = vadd.f32 %v288_v22, %v181_v21  ;;  %v304_v31 = vadd.f32 %v414_v25, %v295_v23 }
  0xd5   :  { %v309_v27 = vld [vmem:[#allocation2 + $0x20] sm:$0xff]  ;;  %v303_v36 = vadd.f32 %v414_v25, %v294_v28 }
  0xd6   :  { %v319_v29 = vrot.slane %v309_v27, 1 }
  0xd7   :  { %v307_v32 = vld [vmem:[#allocation2 + $0x8] sm:$0xff] }
  0xd8   :  { %v321_v33 = vsel %vm315_vm4, %v319_v29, %v320_v26  ;;  %v316_v34 = vrot.slane %v307_v32, 1 }
  0xd9   :  { %v325_v35 = vadd.f32 %v321_v33, %v304_v31 }
  0xda   :  { %v318_v37 = vsel %vm315_vm4, %v316_v34, %v317_v30 }
  0xdb   :  { %v324_v38 = vadd.f32 %v318_v37, %v303_v36  ;;  %v327_v39 = vsel %vm268_vm2, %v325_v35, 0.0 }
  0xdd   :  { %v326_v40 = vsel %vm268_vm2, %v324_v38, 0.0 }
  0xde   :  { %v328_v41 = vadd.f32 %v327_v39, %v326_v40 }
  0xe0   :  { %v329_v42 = vrot.slane %v328_v41, 4 }
  0xe2   :  { %v330_v43 = vadd.f32 %v329_v42, %v328_v41 }
  0xe4   :  { %v331_v44 = vrot.slane %v330_v43, 2 }
  0xe6   :  { %v332_v45 = vadd.f32 %v331_v44, %v330_v43 }
  0xe8   :  { %v333_v46 = vrot.slane %v332_v45, 1 }
  0xea   :  { %v334_v47 = vadd.f32 %v333_v46, %v332_v45 }
  0xec   :  { %v336_v48 = vmul.f32 0.0625, %v334_v47 }
  0xee   :  { %v337_v49 = vsub.f32 %v324_v38, %v336_v48  ;;  %v338_v50 = vsub.f32 %v325_v35, %v336_v48 }
  0xf0   :  { %v339_v51 = vmul.f32 %v337_v49, %v337_v49  ;;  %v340_v52 = vmul.f32 %v338_v50, %v338_v50 }
  0xf2   :  { %v341_v53 = vsel %vm268_vm2, %v339_v51, 0.0  ;;  %v342_v54 = vsel %vm268_vm2, %v340_v52, 0.0 }
  0xf3   :  { %v343_v55 = vadd.f32 %v342_v54, %v341_v53 }
  0xf5   :  { %v344_v56 = vrot.slane %v343_v55, 4 }
  0xf7   :  { %v345_v57 = vadd.f32 %v344_v56, %v343_v55 }
  0xf9   :  { %v346_v58 = vrot.slane %v345_v57, 2 }
  0xfb   :  { %v347_v59 = vadd.f32 %v346_v58, %v345_v57 }
  0xfd   :  { %v348_v60 = vrot.slane %v347_v59, 1 }
  0xff   :  { %v349_v61 = vadd.f32 %v348_v60, %v347_v59 }
 0x101   :  { %v350_v62 = vmul.f32 0.0625, %v349_v61 }
 0x103   :  { %v351_v63 = vadd.f32 1e-05, %v350_v62 }
 0x105   :  { %447 = vrsqrt.f32 %v351_v63 }
 0x112   :  { %v448_v0 = vpop.eup %447 }
 0x113   :  { %v353_v2 = vmul.f32 %v448_v0, %v337_v49  ;;  %v354_v3 = vmul.f32 %v448_v0, %v338_v50 }
 0x115   :  { %v362_v5 = vmul.f32 %v415_v1, %v353_v2  ;;  %v363_v6 = vmul.f32 %v415_v1, %v354_v3 }
 0x117   :  { %v371_v7 = vadd.f32 %v416_v4, %v362_v5  ;;  %v372_v8 = vadd.f32 %v416_v4, %v363_v6 }
 0x119   :  { %v417_v9 = vmul.f32 -1.442695, %v371_v7  ;;  %v418_v10 = vmul.f32 -1.442695, %v372_v8 }
 0x11b   :  { %449 = vpow2.f32 %v417_v9 }
 0x11c   :  { %451 = vpow2.f32 %v418_v10 }
 0x128   :  { %v450_v11 = vpop.eup %449 }
 0x129   :  { %v452_v12 = vpop.eup %451  ;;  %v379_v13 = vadd.f32 1.0, %v450_v11 }
 0x12a   :  { %v380_v14 = vadd.f32 1.0, %v452_v12 }
 0x12b   :  { %453 = vrcp.f32 %v379_v13 }
 0x12c   :  { %455 = vrcp.f32 %v380_v14 }
 0x138   :  { %v454_v15 = vpop.eup %453 }
 0x139   :  { %v456_v16 = vpop.eup %455  ;;  %v385_v17 = vmul.f32 %v454_v15, %v371_v7 }
 0x13a   :  { %v386_v18 = vmul.f32 %v456_v16, %v372_v8 }
 0x13b   :  { %387 = vst.msk [vmem:[#allocation3] sm:$0xff] %vm268_vm2, %v385_v17 }
 0x13c   :  { %388 = vst.msk [vmem:[#allocation3 + $0x8] sm:$0xff] %vm268_vm2, %v386_v18 }
 0x13d   :  { %468 = shalt.err (!%p465_p4)
}
 0x13e   :  { %s481_s7 = smov 128   ;;  %s482_s8 = smov 8  }
 0x13f   :  { %400 = dma.vmem_to_hbm [thread:$0]  %s395_s6, 256, %s567_s5, [#allocation4], %s481_s7, %s481_s7, %s482_s8  }
 0x140   :  { %477 = dma.done.wait [#allocation4], 256  }
 0x141   :  { %478 = vsyncadd [#allocation4], 4294967040 }
 0x142   :  { %404 = vsyncpa [#allocation4], 1 }

</bundles_post_ra>
